<compile_context>
chip_gen: v5e
topology: v5e:2x2
jax: 0.10.0
libtpu: 0.0.40
codegen_flags: <defaults>
</compile_context>

<pallas_src>
import jax
import jax.numpy as jnp
from jax.experimental import pallas as pl
from jax.experimental.pallas import tpu as pltpu

_LANE = 128
_SUBLANE = 8


def _contract_and_store(v_rows, u_rows, out_ref, *, TB, L, K, K_pad):
    """pred[t, l, k] = sum_h v[t, l, h] * u[t, k, h]; one lane-padded store."""
    H = v_rows.shape[-1]
    v = v_rows.reshape(TB, L, H)
    u = u_rows.reshape(TB, K, H)
    # Tiny contraction -> VPU broadcast-multiply + lane reduce (skip the MXU).
    pred = jnp.sum(v[:, :, None, :] * u[:, None, :, :], axis=-1)   # (TB, L, K)
    pred = pred.reshape(TB * L, K)
    if K_pad > K:
        pred = jnp.concatenate(
            [pred, jnp.zeros((TB * L, K_pad - K), jnp.float32)], axis=-1)
    out_ref[...] = pred            # single full-block store (no WAW hazard)


def _make_vmem_kernel(TB, L, K, H, K_pad):
    """Embedding tables resident in VMEM; gather via dynamic sublane loads."""

    def kernel(center_ref, conneg_ref,        # SMEM scalar prefetch: (B*L,), (B*K,)
               emb_v_ref, emb_u_ref,          # VMEM-resident (V, H) blocks
               out_ref,                       # VMEM (TB*L, K_pad)
               v_scr, u_scr):                 # VMEM (TB*L, H), (TB*K, H)
        b = pl.program_id(0)
        c0 = b * (TB * L)
        n0 = b * (TB * K)
        for r in range(TB * L):
            v_scr[pl.ds(r, 1), :] = emb_v_ref[pl.ds(center_ref[c0 + r], 1), :]
        for r in range(TB * K):
            u_scr[pl.ds(r, 1), :] = emb_u_ref[pl.ds(conneg_ref[n0 + r], 1), :]
        _contract_and_store(v_scr[...], u_scr[...], out_ref,
                            TB=TB, L=L, K=K, K_pad=K_pad)

    return kernel


def _make_hbm_kernel(TB, L, K, H, K_pad):
    """Tables stay in HBM; per-row DMA gather, double-buffered across steps."""
    NV = TB * L
    NU = TB * K

    def kernel(center_ref, conneg_ref,        # SMEM scalar prefetch
               emb_v_hbm, emb_u_hbm,          # HBM refs (memory_space=pl.ANY)
               out_ref,                       # VMEM (TB*L, K_pad)
               v_buf, u_buf, sems):           # (2,NV,H), (2,NU,H), DMA sems (2,)
        b = pl.program_id(0)
        nb = pl.num_programs(0)
        slot = b % 2

        def issue(step, slot_):
            c0 = step * NV
            n0 = step * NU
            for r in range(NV):
                pltpu.make_async_copy(
                    emb_v_hbm.at[pl.ds(center_ref[c0 + r], 1), :],
                    v_buf.at[slot_, pl.ds(r, 1), :],
                    sems.at[slot_]).start()
            for r in range(NU):
                pltpu.make_async_copy(
                    emb_u_hbm.at[pl.ds(conneg_ref[n0 + r], 1), :],
                    u_buf.at[slot_, pl.ds(r, 1), :],
                    sems.at[slot_]).start()

        @pl.when(b == 0)             # warm-up: first step fetches its own rows
        def _():
            issue(b, slot)

        @pl.when(b + 1 < nb)         # prefetch next step's rows -> hide latency
        def _():
            issue(b + 1, 1 - slot)

        # Wait for this step's gather.  All row copies of a slot share one DMA
        # semaphore; we recreate a matching (1, H) wait per row so the total
        # decrement equals the total signalled amount, and nothing is read
        # before every wait has completed.
        for r in range(NV):
            pltpu.make_async_copy(
                emb_v_hbm.at[pl.ds(0, 1), :],
                v_buf.at[slot, pl.ds(r, 1), :],
                sems.at[slot]).wait()
        for r in range(NU):
            pltpu.make_async_copy(
                emb_u_hbm.at[pl.ds(0, 1), :],
                u_buf.at[slot, pl.ds(r, 1), :],
                sems.at[slot]).wait()

        _contract_and_store(v_buf[slot], u_buf[slot], out_ref,
                            TB=TB, L=L, K=K, K_pad=K_pad)

    return kernel


def _choose_block_b(B, L, K, max_fanout=64):
    """Batch elements per grid step (TB): output block must be legal
    (TB*L multiple of 8 or equal to B*L); prefer >=2 grid steps (v7x has two
    TensorCores) and a bounded per-step DMA fan-out, then the largest TB."""
    legal = [tb for tb in range(1, B + 1)
             if B % tb == 0
             and ((tb * L) % _SUBLANE == 0 or tb * L == B * L)]

    def score(tb):
        return (B // tb >= 2, tb * (L + K) <= max_fanout, tb)

    return max(legal, key=score)


def word2vec_forward(center, con_neg, emb_v, emb_u, *,
                     block_b=None,
                     force_hbm_gather=False,
                     vmem_table_budget_bytes=4 * 1024 * 1024):
    """pred = bmm(emb_v[center], emb_u[con_neg].transpose(1, 2)) -> (B, L, K)."""
    B, L = center.shape
    Bn, K = con_neg.shape
    assert Bn == B
    V, H = emb_v.shape
    assert emb_u.shape == (V, H)

    TB = _choose_block_b(B, L, K) if block_b is None else block_b
    assert B % TB == 0
    grid = (B // TB,)
    K_pad = ((K + _LANE - 1) // _LANE) * _LANE     # lane-dense output width

    # Flatten indices -> tiny 1-D SMEM arrays (2-D SMEM pads rows to 128 lanes).
    center_flat = center.reshape(B * L).astype(jnp.int32)
    conneg_flat = con_neg.reshape(B * K).astype(jnp.int32)
    emb_v = emb_v.astype(jnp.float32)
    emb_u = emb_u.astype(jnp.float32)

    out_spec = pl.BlockSpec((TB * L, K_pad), lambda b, c_ref, n_ref: (b, 0))
    out_shape = jax.ShapeDtypeStruct((B * L, K_pad), jnp.float32)

    tables_bytes = 2 * V * H * 4
    use_vmem_tables = (not force_hbm_gather) and (
        tables_bytes <= vmem_table_budget_bytes)

    if use_vmem_tables:
        # Tables fit on chip: stage them in VMEM once (grid-invariant block)
        # and gather rows with dynamic loads -- no per-row HBM DMAs.
        kernel = _make_vmem_kernel(TB, L, K, H, K_pad)
        grid_spec = pltpu.PrefetchScalarGridSpec(
            num_scalar_prefetch=2,
            grid=grid,
            in_specs=[
                pl.BlockSpec((V, H), lambda b, c_ref, n_ref: (0, 0)),
                pl.BlockSpec((V, H), lambda b, c_ref, n_ref: (0, 0)),
            ],
            out_specs=out_spec,
            scratch_shapes=[
                pltpu.VMEM((TB * L, H), jnp.float32),
                pltpu.VMEM((TB * K, H), jnp.float32),
            ],
        )
        compiler_params = pltpu.CompilerParams(
            dimension_semantics=("parallel",),   # shard batch over v7x's 2 TCs
        )
    else:
        # Large-vocab fallback: HBM-resident tables with a double-buffered
        # manual row gather.  The cross-step prefetch carries state in scratch,
        # so this grid axis must stay sequential ("arbitrary").
        kernel = _make_hbm_kernel(TB, L, K, H, K_pad)
        grid_spec = pltpu.PrefetchScalarGridSpec(
            num_scalar_prefetch=2,
            grid=grid,
            in_specs=[
                pl.BlockSpec(memory_space=pl.ANY),
                pl.BlockSpec(memory_space=pl.ANY),
            ],
            out_specs=out_spec,
            scratch_shapes=[
                pltpu.VMEM((2, TB * L, H), jnp.float32),
                pltpu.VMEM((2, TB * K, H), jnp.float32),
                pltpu.SemaphoreType.DMA((2,)),
            ],
        )
        compiler_params = pltpu.CompilerParams(
            dimension_semantics=("arbitrary",),
        )

    out_padded = pl.pallas_call(
        kernel,
        out_shape=out_shape,
        grid_spec=grid_spec,
        compiler_params=compiler_params,
    )(center_flat, conneg_flat, emb_v, emb_u)

    # Strip the lane padding and restore the PyTorch-shaped (B, L, K) result.
    return out_padded.reshape(B, L, K_pad)[:, :, :K]


def word2vec_reference(center, con_neg, emb_v, emb_u):
    v = emb_v[center]                            # (B, L, H)
    u = emb_u[con_neg]                           # (B, K, H)
    return jnp.einsum('blh,bkh->blk', v, u)


if __name__ == "__main__":
    root = jax.random.PRNGKey(0)

    def run_case(case_id, vocab_size, hidden_dim, batch, L, K):
        key = jax.random.fold_in(root, case_id)
        k_v, k_u, k_c, k_n = jax.random.split(key, 4)
        # nn.Embedding default init: N(0, 1)
        emb_v = jax.random.normal(k_v, (vocab_size, hidden_dim), jnp.float32)
        emb_u = jax.random.normal(k_u, (vocab_size, hidden_dim), jnp.float32)
        center = jax.random.randint(k_c, (batch, L), 0, vocab_size, jnp.int32)
        con_neg = jax.random.randint(k_n, (batch, K), 0, vocab_size, jnp.int32)

        ref = word2vec_reference(center, con_neg, emb_v, emb_u)
        for force_hbm in (False, True):
            pred = word2vec_forward(center, con_neg, emb_v, emb_u,
                                    force_hbm_gather=force_hbm)
            pred = jax.block_until_ready(pred)
            assert pred.shape == (batch, L, K), (pred.shape, force_hbm)
            assert jnp.allclose(pred, ref, atol=1e-4, rtol=1e-4), \
                f"mismatch vs reference (case={case_id}, hbm={force_hbm})"

    # Word2vec-sized config: 1 center word, 1 positive + 7 negative samples.
    run_case(0, vocab_size=128, hidden_dim=32, batch=2, L=1, K=8)
    # Larger config exercising TB-batching, grid > 1 and the double-buffered
    # HBM-gather path.
    run_case(1, vocab_size=512, hidden_dim=64, batch=16, L=2, K=9)

    print("KERNEL_OK")
</pallas_src>

<mosaic_0001>
module attributes {stable_mosaic.version = 11 : i64} {
  func.func @kernel(%arg0: i32, %arg1: memref<2xi32, #tpu.memory_space<smem>>, %arg2: memref<16xi32, #tpu.memory_space<smem>>, %arg3: memref<128x32xf32, #tpu.memory_space<vmem>>, %arg4: memref<128x32xf32, #tpu.memory_space<vmem>>, %arg5: memref<2x128xf32, #tpu.memory_space<vmem>>, %arg6: memref<2x32xf32, #tpu.memory_space<vmem>>, %arg7: memref<16x32xf32, #tpu.memory_space<vmem>>) attributes {dimension_semantics = [#tpu.dimension_semantics<parallel>], iteration_bounds = array<i64: 1>, scalar_prefetch = 2 : i64, scratch_operands = 2 : i64, tpu.core_type = #tpu.core_type<tc>, window_params = [{pipeline_mode = #tpu.pipeline_mode<synchronous>, transform_indices = @transform_0, window_bounds = array<i64: 128, 32>}, {pipeline_mode = #tpu.pipeline_mode<synchronous>, transform_indices = @transform_1, window_bounds = array<i64: 128, 32>}, {transform_indices = @transform_2, window_bounds = array<i64: 2, 128>}]} {
    %c2_i32 = arith.constant 2 : i32
    %0 = arith.muli %arg0, %c2_i32 : i32
    %c16_i32 = arith.constant 16 : i32
    %1 = arith.muli %arg0, %c16_i32 : i32
    %c0_i32 = arith.constant 0 : i32
    %2 = arith.addi %0, %c0_i32 : i32
    %3 = arith.index_cast %2 : i32 to index
    %4 = memref.load %arg1[%3] : memref<2xi32, #tpu.memory_space<smem>>
    %5 = arith.index_cast %4 : i32 to index
    %c0 = arith.constant 0 : index
    %6 = vector.load %arg3[%5, %c0] : memref<128x32xf32, #tpu.memory_space<vmem>>, vector<1x32xf32>
    %c0_0 = arith.constant 0 : index
    %c0_1 = arith.constant 0 : index
    %7 = vector.load %arg6[%c0_0, %c0_1] : memref<2x32xf32, #tpu.memory_space<vmem>>, vector<1x32xf32>
    tpu.vector_store %arg6[%c0_0, %c0_1], %6 {strides = array<i32>} : memref<2x32xf32, #tpu.memory_space<vmem>>, vector<1x32xf32>,
    %c1_i32 = arith.constant 1 : i32
    %8 = arith.addi %0, %c1_i32 : i32
    %9 = arith.index_cast %8 : i32 to index
    %10 = memref.load %arg1[%9] : memref<2xi32, #tpu.memory_space<smem>>
    %11 = arith.index_cast %10 : i32 to index
    %c0_2 = arith.constant 0 : index
    %12 = vector.load %arg3[%11, %c0_2] : memref<128x32xf32, #tpu.memory_space<vmem>>, vector<1x32xf32>
    %c1 = arith.constant 1 : index
    %c0_3 = arith.constant 0 : index
    %13 = vector.load %arg6[%c1, %c0_3] : memref<2x32xf32, #tpu.memory_space<vmem>>, vector<1x32xf32>
    tpu.vector_store %arg6[%c1, %c0_3], %12 {strides = array<i32>} : memref<2x32xf32, #tpu.memory_space<vmem>>, vector<1x32xf32>,
    %c0_i32_4 = arith.constant 0 : i32
    %14 = arith.addi %1, %c0_i32_4 : i32
    %15 = arith.index_cast %14 : i32 to index
    %16 = memref.load %arg2[%15] : memref<16xi32, #tpu.memory_space<smem>>
    %17 = arith.index_cast %16 : i32 to index
    %c0_5 = arith.constant 0 : index
    %18 = vector.load %arg4[%17, %c0_5] : memref<128x32xf32, #tpu.memory_space<vmem>>, vector<1x32xf32>
    %c0_6 = arith.constant 0 : index
    %c0_7 = arith.constant 0 : index
    %19 = vector.load %arg7[%c0_6, %c0_7] : memref<16x32xf32, #tpu.memory_space<vmem>>, vector<1x32xf32>
    tpu.vector_store %arg7[%c0_6, %c0_7], %18 {strides = array<i32>} : memref<16x32xf32, #tpu.memory_space<vmem>>, vector<1x32xf32>,
    %c1_i32_8 = arith.constant 1 : i32
    %20 = arith.addi %1, %c1_i32_8 : i32
    %21 = arith.index_cast %20 : i32 to index
    %22 = memref.load %arg2[%21] : memref<16xi32, #tpu.memory_space<smem>>
    %23 = arith.index_cast %22 : i32 to index
    %c0_9 = arith.constant 0 : index
    %24 = vector.load %arg4[%23, %c0_9] : memref<128x32xf32, #tpu.memory_space<vmem>>, vector<1x32xf32>
    %c1_10 = arith.constant 1 : index
    %c0_11 = arith.constant 0 : index
    %25 = vector.load %arg7[%c1_10, %c0_11] : memref<16x32xf32, #tpu.memory_space<vmem>>, vector<1x32xf32>
    tpu.vector_store %arg7[%c1_10, %c0_11], %24 {strides = array<i32>} : memref<16x32xf32, #tpu.memory_space<vmem>>, vector<1x32xf32>,
    %c2_i32_12 = arith.constant 2 : i32
    %26 = arith.addi %1, %c2_i32_12 : i32
    %27 = arith.index_cast %26 : i32 to index
    %28 = memref.load %arg2[%27] : memref<16xi32, #tpu.memory_space<smem>>
    %29 = arith.index_cast %28 : i32 to index
    %c0_13 = arith.constant 0 : index
    %30 = vector.load %arg4[%29, %c0_13] : memref<128x32xf32, #tpu.memory_space<vmem>>, vector<1x32xf32>
    %c2 = arith.constant 2 : index
    %c0_14 = arith.constant 0 : index
    %31 = vector.load %arg7[%c2, %c0_14] : memref<16x32xf32, #tpu.memory_space<vmem>>, vector<1x32xf32>
    tpu.vector_store %arg7[%c2, %c0_14], %30 {strides = array<i32>} : memref<16x32xf32, #tpu.memory_space<vmem>>, vector<1x32xf32>,
    %c3_i32 = arith.constant 3 : i32
    %32 = arith.addi %1, %c3_i32 : i32
    %33 = arith.index_cast %32 : i32 to index
    %34 = memref.load %arg2[%33] : memref<16xi32, #tpu.memory_space<smem>>
    %35 = arith.index_cast %34 : i32 to index
    %c0_15 = arith.constant 0 : index
    %36 = vector.load %arg4[%35, %c0_15] : memref<128x32xf32, #tpu.memory_space<vmem>>, vector<1x32xf32>
    %c3 = arith.constant 3 : index
    %c0_16 = arith.constant 0 : index
    %37 = vector.load %arg7[%c3, %c0_16] : memref<16x32xf32, #tpu.memory_space<vmem>>, vector<1x32xf32>
    tpu.vector_store %arg7[%c3, %c0_16], %36 {strides = array<i32>} : memref<16x32xf32, #tpu.memory_space<vmem>>, vector<1x32xf32>,
    %c4_i32 = arith.constant 4 : i32
    %38 = arith.addi %1, %c4_i32 : i32
    %39 = arith.index_cast %38 : i32 to index
    %40 = memref.load %arg2[%39] : memref<16xi32, #tpu.memory_space<smem>>
    %41 = arith.index_cast %40 : i32 to index
    %c0_17 = arith.constant 0 : index
    %42 = vector.load %arg4[%41, %c0_17] : memref<128x32xf32, #tpu.memory_space<vmem>>, vector<1x32xf32>
    %c4 = arith.constant 4 : index
    %c0_18 = arith.constant 0 : index
    %43 = vector.load %arg7[%c4, %c0_18] : memref<16x32xf32, #tpu.memory_space<vmem>>, vector<1x32xf32>
    tpu.vector_store %arg7[%c4, %c0_18], %42 {strides = array<i32>} : memref<16x32xf32, #tpu.memory_space<vmem>>, vector<1x32xf32>,
    %c5_i32 = arith.constant 5 : i32
    %44 = arith.addi %1, %c5_i32 : i32
    %45 = arith.index_cast %44 : i32 to index
    %46 = memref.load %arg2[%45] : memref<16xi32, #tpu.memory_space<smem>>
    %47 = arith.index_cast %46 : i32 to index
    %c0_19 = arith.constant 0 : index
    %48 = vector.load %arg4[%47, %c0_19] : memref<128x32xf32, #tpu.memory_space<vmem>>, vector<1x32xf32>
    %c5 = arith.constant 5 : index
    %c0_20 = arith.constant 0 : index
    %49 = vector.load %arg7[%c5, %c0_20] : memref<16x32xf32, #tpu.memory_space<vmem>>, vector<1x32xf32>
    tpu.vector_store %arg7[%c5, %c0_20], %48 {strides = array<i32>} : memref<16x32xf32, #tpu.memory_space<vmem>>, vector<1x32xf32>,
    %c6_i32 = arith.constant 6 : i32
    %50 = arith.addi %1, %c6_i32 : i32
    %51 = arith.index_cast %50 : i32 to index
    %52 = memref.load %arg2[%51] : memref<16xi32, #tpu.memory_space<smem>>
    %53 = arith.index_cast %52 : i32 to index
    %c0_21 = arith.constant 0 : index
    %54 = vector.load %arg4[%53, %c0_21] : memref<128x32xf32, #tpu.memory_space<vmem>>, vector<1x32xf32>
    %c6 = arith.constant 6 : index
    %c0_22 = arith.constant 0 : index
    %55 = vector.load %arg7[%c6, %c0_22] : memref<16x32xf32, #tpu.memory_space<vmem>>, vector<1x32xf32>
    tpu.vector_store %arg7[%c6, %c0_22], %54 {strides = array<i32>} : memref<16x32xf32, #tpu.memory_space<vmem>>, vector<1x32xf32>,
    %c7_i32 = arith.constant 7 : i32
    %56 = arith.addi %1, %c7_i32 : i32
    %57 = arith.index_cast %56 : i32 to index
    %58 = memref.load %arg2[%57] : memref<16xi32, #tpu.memory_space<smem>>
    %59 = arith.index_cast %58 : i32 to index
    %c0_23 = arith.constant 0 : index
    %60 = vector.load %arg4[%59, %c0_23] : memref<128x32xf32, #tpu.memory_space<vmem>>, vector<1x32xf32>
    %c7 = arith.constant 7 : index
    %c0_24 = arith.constant 0 : index
    %61 = vector.load %arg7[%c7, %c0_24] : memref<16x32xf32, #tpu.memory_space<vmem>>, vector<1x32xf32>
    tpu.vector_store %arg7[%c7, %c0_24], %60 {strides = array<i32>} : memref<16x32xf32, #tpu.memory_space<vmem>>, vector<1x32xf32>,
    %c8_i32 = arith.constant 8 : i32
    %62 = arith.addi %1, %c8_i32 : i32
    %63 = arith.index_cast %62 : i32 to index
    %64 = memref.load %arg2[%63] : memref<16xi32, #tpu.memory_space<smem>>
    %65 = arith.index_cast %64 : i32 to index
    %c0_25 = arith.constant 0 : index
    %66 = vector.load %arg4[%65, %c0_25] : memref<128x32xf32, #tpu.memory_space<vmem>>, vector<1x32xf32>
    %c8 = arith.constant 8 : index
    %c0_26 = arith.constant 0 : index
    %67 = vector.load %arg7[%c8, %c0_26] : memref<16x32xf32, #tpu.memory_space<vmem>>, vector<1x32xf32>
    tpu.vector_store %arg7[%c8, %c0_26], %66 {strides = array<i32>} : memref<16x32xf32, #tpu.memory_space<vmem>>, vector<1x32xf32>,
    %c9_i32 = arith.constant 9 : i32
    %68 = arith.addi %1, %c9_i32 : i32
    %69 = arith.index_cast %68 : i32 to index
    %70 = memref.load %arg2[%69] : memref<16xi32, #tpu.memory_space<smem>>
    %71 = arith.index_cast %70 : i32 to index
    %c0_27 = arith.constant 0 : index
    %72 = vector.load %arg4[%71, %c0_27] : memref<128x32xf32, #tpu.memory_space<vmem>>, vector<1x32xf32>
    %c9 = arith.constant 9 : index
    %c0_28 = arith.constant 0 : index
    %73 = vector.load %arg7[%c9, %c0_28] : memref<16x32xf32, #tpu.memory_space<vmem>>, vector<1x32xf32>
    tpu.vector_store %arg7[%c9, %c0_28], %72 {strides = array<i32>} : memref<16x32xf32, #tpu.memory_space<vmem>>, vector<1x32xf32>,
    %c10_i32 = arith.constant 10 : i32
    %74 = arith.addi %1, %c10_i32 : i32
    %75 = arith.index_cast %74 : i32 to index
    %76 = memref.load %arg2[%75] : memref<16xi32, #tpu.memory_space<smem>>
    %77 = arith.index_cast %76 : i32 to index
    %c0_29 = arith.constant 0 : index
    %78 = vector.load %arg4[%77, %c0_29] : memref<128x32xf32, #tpu.memory_space<vmem>>, vector<1x32xf32>
    %c10 = arith.constant 10 : index
    %c0_30 = arith.constant 0 : index
    %79 = vector.load %arg7[%c10, %c0_30] : memref<16x32xf32, #tpu.memory_space<vmem>>, vector<1x32xf32>
    tpu.vector_store %arg7[%c10, %c0_30], %78 {strides = array<i32>} : memref<16x32xf32, #tpu.memory_space<vmem>>, vector<1x32xf32>,
    %c11_i32 = arith.constant 11 : i32
    %80 = arith.addi %1, %c11_i32 : i32
    %81 = arith.index_cast %80 : i32 to index
    %82 = memref.load %arg2[%81] : memref<16xi32, #tpu.memory_space<smem>>
    %83 = arith.index_cast %82 : i32 to index
    %c0_31 = arith.constant 0 : index
    %84 = vector.load %arg4[%83, %c0_31] : memref<128x32xf32, #tpu.memory_space<vmem>>, vector<1x32xf32>
    %c11 = arith.constant 11 : index
    %c0_32 = arith.constant 0 : index
    %85 = vector.load %arg7[%c11, %c0_32] : memref<16x32xf32, #tpu.memory_space<vmem>>, vector<1x32xf32>
    tpu.vector_store %arg7[%c11, %c0_32], %84 {strides = array<i32>} : memref<16x32xf32, #tpu.memory_space<vmem>>, vector<1x32xf32>,
    %c12_i32 = arith.constant 12 : i32
    %86 = arith.addi %1, %c12_i32 : i32
    %87 = arith.index_cast %86 : i32 to index
    %88 = memref.load %arg2[%87] : memref<16xi32, #tpu.memory_space<smem>>
    %89 = arith.index_cast %88 : i32 to index
    %c0_33 = arith.constant 0 : index
    %90 = vector.load %arg4[%89, %c0_33] : memref<128x32xf32, #tpu.memory_space<vmem>>, vector<1x32xf32>
    %c12 = arith.constant 12 : index
    %c0_34 = arith.constant 0 : index
    %91 = vector.load %arg7[%c12, %c0_34] : memref<16x32xf32, #tpu.memory_space<vmem>>, vector<1x32xf32>
    tpu.vector_store %arg7[%c12, %c0_34], %90 {strides = array<i32>} : memref<16x32xf32, #tpu.memory_space<vmem>>, vector<1x32xf32>,
    %c13_i32 = arith.constant 13 : i32
    %92 = arith.addi %1, %c13_i32 : i32
    %93 = arith.index_cast %92 : i32 to index
    %94 = memref.load %arg2[%93] : memref<16xi32, #tpu.memory_space<smem>>
    %95 = arith.index_cast %94 : i32 to index
    %c0_35 = arith.constant 0 : index
    %96 = vector.load %arg4[%95, %c0_35] : memref<128x32xf32, #tpu.memory_space<vmem>>, vector<1x32xf32>
    %c13 = arith.constant 13 : index
    %c0_36 = arith.constant 0 : index
    %97 = vector.load %arg7[%c13, %c0_36] : memref<16x32xf32, #tpu.memory_space<vmem>>, vector<1x32xf32>
    tpu.vector_store %arg7[%c13, %c0_36], %96 {strides = array<i32>} : memref<16x32xf32, #tpu.memory_space<vmem>>, vector<1x32xf32>,
    %c14_i32 = arith.constant 14 : i32
    %98 = arith.addi %1, %c14_i32 : i32
    %99 = arith.index_cast %98 : i32 to index
    %100 = memref.load %arg2[%99] : memref<16xi32, #tpu.memory_space<smem>>
    %101 = arith.index_cast %100 : i32 to index
    %c0_37 = arith.constant 0 : index
    %102 = vector.load %arg4[%101, %c0_37] : memref<128x32xf32, #tpu.memory_space<vmem>>, vector<1x32xf32>
    %c14 = arith.constant 14 : index
    %c0_38 = arith.constant 0 : index
    %103 = vector.load %arg7[%c14, %c0_38] : memref<16x32xf32, #tpu.memory_space<vmem>>, vector<1x32xf32>
    tpu.vector_store %arg7[%c14, %c0_38], %102 {strides = array<i32>} : memref<16x32xf32, #tpu.memory_space<vmem>>, vector<1x32xf32>,
    %c15_i32 = arith.constant 15 : i32
    %104 = arith.addi %1, %c15_i32 : i32
    %105 = arith.index_cast %104 : i32 to index
    %106 = memref.load %arg2[%105] : memref<16xi32, #tpu.memory_space<smem>>
    %107 = arith.index_cast %106 : i32 to index
    %c0_39 = arith.constant 0 : index
    %108 = vector.load %arg4[%107, %c0_39] : memref<128x32xf32, #tpu.memory_space<vmem>>, vector<1x32xf32>
    %c15 = arith.constant 15 : index
    %c0_40 = arith.constant 0 : index
    %109 = vector.load %arg7[%c15, %c0_40] : memref<16x32xf32, #tpu.memory_space<vmem>>, vector<1x32xf32>
    tpu.vector_store %arg7[%c15, %c0_40], %108 {strides = array<i32>} : memref<16x32xf32, #tpu.memory_space<vmem>>, vector<1x32xf32>,
    %c0_41 = arith.constant 0 : index
    %c0_42 = arith.constant 0 : index
    %110 = vector.load %arg6[%c0_41, %c0_42] : memref<2x32xf32, #tpu.memory_space<vmem>>, vector<2x32xf32>
    %c0_43 = arith.constant 0 : index
    %c0_44 = arith.constant 0 : index
    %111 = vector.load %arg7[%c0_43, %c0_44] : memref<16x32xf32, #tpu.memory_space<vmem>>, vector<16x32xf32>
    %112 = vector.shape_cast %110 : vector<2x32xf32> to vector<2x1x32xf32>
    %113 = vector.shape_cast %111 : vector<16x32xf32> to vector<2x8x32xf32>
    %114 = vector.shape_cast %112 : vector<2x1x32xf32> to vector<2x1x1x32xf32>
    %115 = vector.shape_cast %113 : vector<2x8x32xf32> to vector<2x1x8x32xf32>
    %116 = vector.broadcast %114 : vector<2x1x1x32xf32> to vector<2x1x8x32xf32>
    %117 = arith.mulf %116, %115 : vector<2x1x8x32xf32>
    %cst = arith.constant dense<0.000000e+00> : vector<2x1x8xf32>
    %118 = vector.multi_reduction <add>, %117, %cst [3] : vector<2x1x8x32xf32> to vector<2x1x8xf32>
    %119 = vector.shape_cast %118 : vector<2x1x8xf32> to vector<2x8xf32>
    %cst_45 = arith.constant 0.000000e+00 : f32
    %120 = vector.broadcast %cst_45 : f32 to vector<2x120xf32>
    %121 = tpu.concatenate %119, %120 in 1 : vector<2x8xf32>, vector<2x120xf32> -> vector<2x128xf32>
    %c0_46 = arith.constant 0 : index
    %c0_47 = arith.constant 0 : index
    %122 = vector.load %arg5[%c0_46, %c0_47] : memref<2x128xf32, #tpu.memory_space<vmem>>, vector<2x128xf32>
    tpu.vector_store %arg5[%c0_46, %c0_47], %121 {strides = array<i32>} : memref<2x128xf32, #tpu.memory_space<vmem>>, vector<2x128xf32>,
    return
  }
  func.func @transform_0(%arg0: i32, %arg1: memref<2xi32, #tpu.memory_space<smem>>, %arg2: memref<16xi32, #tpu.memory_space<smem>>) -> (i32, i32) {
    %c0_i32 = arith.constant 0 : i32
    %c0_i32_0 = arith.constant 0 : i32
    %c0_i32_1 = arith.constant 0 : i32
    return %c0_i32, %c0_i32_0 : i32, i32
  }
  func.func @transform_1(%arg0: i32, %arg1: memref<2xi32, #tpu.memory_space<smem>>, %arg2: memref<16xi32, #tpu.memory_space<smem>>) -> (i32, i32) {
    %c0_i32 = arith.constant 0 : i32
    %c0_i32_0 = arith.constant 0 : i32
    %c0_i32_1 = arith.constant 0 : i32
    return %c0_i32, %c0_i32_0 : i32, i32
  }
  func.func @transform_2(%arg0: i32, %arg1: memref<2xi32, #tpu.memory_space<smem>>, %arg2: memref<16xi32, #tpu.memory_space<smem>>) -> (i32, i32) {
    %c0_i32 = arith.constant 0 : i32
    %c0_i32_0 = arith.constant 0 : i32
    return %arg0, %c0_i32 : i32, i32
  }
}

</mosaic_0001>

<bundles_post_ra>
// kernel: tpu_custom_call.1
= control target key start
LH: loop header
LB: loop body
LE: loop exit
PB: predicated region body
PF: predicated region fallthrough
CT: control target
= control target key end

     0   :  { %s253_s21 = smov [#allocation5]   ;;  %s254_s22 = smov [#allocation6]   ;;  %s362_s0 = inlined_call_operand.vmem [shape: s32[2], index: 0, kind: input, shape index: {}]   ;;  %s363_s2 = inlined_call_operand.vmem [shape: f32[128,32], index: 2, kind: input, shape index: {}]   ;;  %s364_s3 = inlined_call_operand.vmem [shape: f32[128,32], index: 3, kind: input, shape index: {}]   ;;  %s365_s4 = inlined_call_operand.hbm [shape: f32[2,128], index: 4, kind: output, shape index: {}]   ;;  %s366_s1 = inlined_call_operand.vmem [shape: s32[16], index: 1, kind: input, shape index: {}]  }
   0x1   :  { %s10_s17 = sshll.u32 %s362_s0, 4  ;;  %s15_s20 = sshll.u32 %s366_s1, 4  ;;  %s11_s17 = int_to_ptr.vmem [resolvable:$true] %s10_s17  ;;  %s16_s20 = int_to_ptr.vmem [resolvable:$true] %s15_s20 }
   0x2   :  { %13 = dma.vmem_to_smem %s11_s17, 16, %s253_s21, [#allocation4] }
   0x3   :  { %18 = dma.vmem_to_smem %s16_s20, 16, %s254_s22, [#allocation4] }
   0x4   :  { %249 = dma.done.wait [#allocation4], 32 }
   0x5   :  { %250 = vsyncadd [#allocation4], 4294967264 }
   0x6   :  { %21 = sfence }
   0x7   :  { %s29_s23 = sld [smem:[#allocation5]] }
   0x8   :  { %22 = vsyncpa [#allocation8], 0  ;;  %s182_s24 = sld [smem:[#allocation5 + $0x1]]  ;;  %vm32_vm0 = vcmask 253952   ;;  %vm129_vm1 = vcmask 261120   ;;  %v138_v29 = vlaneseq  ;;  %vm142_vm2 = vcmask 1041409  }
   0x9   :  { %s39_s25 = sld [smem:[#allocation6]]  ;;  %s255_s10 = smov [#allocation7]   ;;  %vm145_vm3 = vcmask 64512  }
   0xa   :  { %s183_s26 = sld [smem:[#allocation6 + $0x1]]  ;;  %v139_v30 = vand.u32 127, %v138_v29 }
   0xb   :  { %s184_s27 = sld [smem:[#allocation6 + $0x2]] }
   0xc   :  { %s185_s0 = sld [smem:[#allocation6 + $0x3]] }
   0xd   :  { %s30_s1 = scalar_lea.vmem %s363_s2, %s29_s23  ;;  %s186_s30 = sld [smem:[#allocation6 + $0x4]] }
   0xe   :  { %v31_v0 = vld [vmem:[%s30_s1] sm:$0x1]  ;;  %s36_s7 = scalar_lea.vmem %s363_s2, %s182_s24  ;;  %s187_s8 = sld [smem:[#allocation6 + $0x5]] }
   0xf   :  { %33 = vst.msk [vmem:[#allocation2] sm:$0x1] %vm32_vm0, %v31_v0  ;;  %v37_v1 = vld [vmem:[%s36_s7] sm:$0x1]  ;;  %s40_s11 = scalar_lea.vmem %s364_s3, %s39_s25  ;;  %s188_s12 = sld [smem:[#allocation6 + $0x6]] }
  0x10   :  { %38 = vst.msk [vmem:[#allocation2 + $0x1] sm:$0x1] %vm32_vm0, %v37_v1  ;;  %v41_v2 = vld [vmem:[%s40_s11] sm:$0x1]  ;;  %s45_s15 = scalar_lea.vmem %s364_s3, %s183_s26  ;;  %s189_s16 = sld [smem:[#allocation6 + $0x7]] }
  0x11   :  { %42 = vst.msk [vmem:[#allocation3] sm:$0x1] %vm32_vm0, %v41_v2  ;;  %v46_v3 = vld [vmem:[%s45_s15] sm:$0x1]  ;;  %s50_s18 = scalar_lea.vmem %s364_s3, %s184_s27  ;;  %s190_s19 = sld [smem:[#allocation6 + $0x8]] }
  0x12   :  { %47 = vst.msk [vmem:[#allocation3 + $0x1] sm:$0x1] %vm32_vm0, %v46_v3  ;;  %v51_v4 = vld [vmem:[%s50_s18] sm:$0x1]  ;;  %s55_s22 = scalar_lea.vmem %s364_s3, %s185_s0  ;;  %s191_s23 = sld [smem:[#allocation6 + $0x9]] }
  0x13   :  { %52 = vst.msk [vmem:[#allocation3 + $0x2] sm:$0x1] %vm32_vm0, %v51_v4  ;;  %v56_v5 = vld [vmem:[%s55_s22] sm:$0x1]  ;;  %s60_s26 = scalar_lea.vmem %s364_s3, %s186_s30  ;;  %s192_s28 = sld [smem:[#allocation6 + $0xa]] }
  0x14   :  { %57 = vst.msk [vmem:[#allocation3 + $0x3] sm:$0x1] %vm32_vm0, %v56_v5  ;;  %v61_v6 = vld [vmem:[%s60_s26] sm:$0x1]  ;;  %s65_s1 = scalar_lea.vmem %s364_s3, %s187_s8  ;;  %s193_s5 = sld [smem:[#allocation6 + $0xb]] }
  0x15   :  { %62 = vst.msk [vmem:[#allocation3 + $0x4] sm:$0x1] %vm32_vm0, %v61_v6  ;;  %v66_v7 = vld [vmem:[%s65_s1] sm:$0x1]  ;;  %s70_s7 = scalar_lea.vmem %s364_s3, %s188_s12  ;;  %s194_s9 = sld [smem:[#allocation6 + $0xc]] }
  0x16   :  { %67 = vst.msk [vmem:[#allocation3 + $0x5] sm:$0x1] %vm32_vm0, %v66_v7  ;;  %v71_v8 = vld [vmem:[%s70_s7] sm:$0x1]  ;;  %s75_s11 = scalar_lea.vmem %s364_s3, %s189_s16  ;;  %s195_s13 = sld [smem:[#allocation6 + $0xd]] }
  0x17   :  { %72 = vst.msk [vmem:[#allocation3 + $0x6] sm:$0x1] %vm32_vm0, %v71_v8  ;;  %v76_v9 = vld [vmem:[%s75_s11] sm:$0x1]  ;;  %s80_s15 = scalar_lea.vmem %s364_s3, %s190_s19  ;;  %s196_s21 = sld [smem:[#allocation6 + $0xe]] }
  0x18   :  { %77 = vst.msk [vmem:[#allocation3 + $0x7] sm:$0x1] %vm32_vm0, %v76_v9  ;;  %v118_v10 = vld [vmem:[#allocation2] sm:$0x3]  ;;  %s85_s17 = scalar_lea.vmem %s364_s3, %s191_s23  ;;  %s197_s25 = sld [smem:[#allocation6 + $0xf]] }
  0x19   :  { %v81_v11 = vld [vmem:[%s80_s15] sm:$0x1]  ;;  %s90_s20 = scalar_lea.vmem %s364_s3, %s192_s28  ;;  %v123_v15 = vperm.slane %v118_v10, 0  ;;  %v122_v23 = vrot.slane %v118_v10, 1  ;;  %s155_s8 = sshll.u32 %s365_s4, 4  ;;  %s156_s8 = int_to_ptr.hbm [resolvable:$true] %s155_s8 }
  0x1a   :  { %82 = vst.msk [vmem:[#allocation3 + $0x8] sm:$0x1] %vm32_vm0, %v81_v11  ;;  %v86_v12 = vld [vmem:[%s85_s17] sm:$0x1]  ;;  %s95_s24 = scalar_lea.vmem %s364_s3, %s193_s5 }
  0x1b   :  { %87 = vst.msk [vmem:[#allocation3 + $0x9] sm:$0x1] %vm32_vm0, %v86_v12  ;;  %v91_v13 = vld [vmem:[%s90_s20] sm:$0x1]  ;;  %s100_s27 = scalar_lea.vmem %s364_s3, %s194_s9  ;;  %v124_v24 = vperm.slane %v122_v23, 0 }
  0x1c   :  { %92 = vst.msk [vmem:[#allocation3 + $0xa] sm:$0x1] %vm32_vm0, %v91_v13  ;;  %v96_v14 = vld [vmem:[%s95_s24] sm:$0x1]  ;;  %s105_s1 = scalar_lea.vmem %s364_s3, %s195_s13 }
  0x1d   :  { %97 = vst.msk [vmem:[#allocation3 + $0xb] sm:$0x1] %vm32_vm0, %v96_v14  ;;  %v101_v16 = vld [vmem:[%s100_s27] sm:$0x1]  ;;  %s110_s6 = scalar_lea.vmem %s364_s3, %s196_s21 }
  0x1e   :  { %102 = vst.msk [vmem:[#allocation3 + $0xc] sm:$0x1] %vm32_vm0, %v101_v16  ;;  %v106_v17 = vld [vmem:[%s105_s1] sm:$0x1]  ;;  %s115_s30 = scalar_lea.vmem %s364_s3, %s197_s25  ;;  %s153_s3 = sshll.u32 %s255_s10, 4  ;;  %s154_s3 = int_to_ptr.vmem [resolvable:$true] %s153_s3 }
  0x1f   :  { %107 = vst.msk [vmem:[#allocation3 + $0xd] sm:$0x1] %vm32_vm0, %v106_v17  ;;  %v119_v18 = vld [vmem:[#allocation3] sm:$0xff]  ;;  %v111_v20 = vld [vmem:[%s110_s6] sm:$0x1] }
  0x20   :  { %v127_v19 = vmul.f32 %v123_v15, %v119_v18  ;;  %112 = vst.msk [vmem:[#allocation3 + $0xe] sm:$0x1] %vm32_vm0, %v111_v20  ;;  %v116_v21 = vld [vmem:[%s115_s30] sm:$0x1] }
  0x21   :  { %117 = vst.msk [vmem:[#allocation3 + $0xf] sm:$0x1] %vm32_vm0, %v116_v21 }
  0x22   :  { %v130_v22 = vsel %vm129_vm1, %v127_v19, 0.0 }
  0x23   :  { %131 = vadd.xlane.f32.xlu0 %v130_v22 }
  0x28   :  { %v120_v25 = vld [vmem:[#allocation3 + $0x8] sm:$0xff] }
  0x29   :  { %v128_v26 = vmul.f32 %v124_v24, %v120_v25 }
  0x2b   :  { %v133_v27 = vsel %vm129_vm1, %v128_v26, 0.0 }
  0x2c   :  { %134 = vadd.xlane.f32.xlu0 %v133_v27 }
  0x96   :  { %v132_v28 = vpop.xlane.xlu0 %131 }
  0x97   :  { %v140_v32 = vperm.slane %v132_v28, %v139_v30 }
  0x9f   :  { %v135_v31 = vpop.xlane.xlu0 %134 }
  0xa0   :  { %v141_v33 = vperm.slane %v135_v31, %v139_v30 }
  0xa2   :  { %v143_v34 = vsel %vm142_vm2, %v141_v33, %v140_v32 }
  0xa3   :  { %v146_v35 = vsel %vm145_vm3, %v143_v34, 0.0 }
  0xa4   :  { %147 = vst [vmem:[#allocation7] sm:$0x3] %v146_v35 }
  0xa5   :  { %158 = dma.vmem_to_hbm [thread:$0]  %s154_s3, 32, %s156_s8, [#allocation8]  }
  0xa6   :  { %251 = dma.done.wait [#allocation8], 32  }
  0xa7   :  { %252 = vsyncadd [#allocation8], 4294967264 }
  0xa8   :  { %163 = vsyncpa [#allocation8], 1 }

</bundles_post_ra>
